<compile_context>
chip_gen: v5e
topology: v5e:2x2
jax: 0.10.0
libtpu: 0.0.40
codegen_flags: <defaults>
</compile_context>

<pallas_src>
import numpy as np
import jax
import jax.numpy as jnp
from jax.experimental import pallas as pl
from jax.experimental.pallas import tpu as pltpu


# ----------------------------------------------------------------------------
# mask_generator port (plain numpy, faithful to the PyTorch reference).
# Host-side parameter setup only -- not part of the kernel hot path.
# ----------------------------------------------------------------------------
def _difference(A, B):
    combined = np.concatenate([np.ravel(A), np.ravel(B)])
    unique, counts = np.unique(combined, return_counts=True)
    return unique[counts == 1]


def _intersection(A, B):
    combined = np.concatenate([np.ravel(A), np.ravel(B)])
    unique, counts = np.unique(combined, return_counts=True)
    return unique[counts > 1]


def _zero(a):
    # torch: (a == 0).nonzero()  -> indices where a == 0
    return np.nonzero(np.asarray(a) == 0)[0]


def mask_generator(dependency, hidden_dim=100, n_hid_layers=2, n_edges=5,
                   output_multiplier=1):
    dependency = np.asarray(dependency)
    n_units = len(dependency)
    point_to = np.zeros((n_hid_layers, hidden_dim, n_units), dtype=np.float32)
    point_from = np.zeros((n_hid_layers, hidden_dim, n_units), dtype=np.float32)
    mask = np.zeros((n_hid_layers + 1, hidden_dim, hidden_dim), dtype=np.float32)
    for u in range(1, n_units):
        dep_on = np.nonzero(dependency[u, :u])[0]
        other = _zero(dependency[u])
        for d in dep_on:
            prev_selected = np.array([u], dtype=np.int64)
            for l in range(n_hid_layers):
                avail = _zero(point_from[l, :, :d + 1].sum(axis=-1)
                              + point_to[l][:, other].sum(axis=-1))
                priority = np.nonzero(point_to[l, :, d])[0]
                priority = _intersection(priority, avail).astype(np.int64)
                avail = np.concatenate(
                    [priority, _difference(avail, priority).astype(np.int64)])
                new_edges = 0
                full_cycle = False
                counter = 0
                prev = int(prev_selected[0])
                selected_list = []
                while True:
                    selected = np.nonzero(mask[l, avail, prev] == 0)[0]
                    if selected.size == 1:
                        # torch .squeeze() -> 0-dim -> "warning" break branch
                        break
                    selected = selected[0]  # raises on empty, same as torch
                    selected_list.append(int(avail[selected]))
                    mask[l, avail[selected], prev] = 1
                    point_to[l, avail[selected], d] = 1
                    point_from[l, avail[selected], u] = 1
                    new_edges += 1
                    counter += 1
                    if counter >= len(prev_selected):
                        full_cycle = True
                        counter = 0
                    if new_edges == n_edges and full_cycle:
                        break
                    prev = int(prev_selected[counter])
                prev_selected = np.array(selected_list, dtype=np.int64)
            mask[-1, d, prev_selected] = 1
    mask = np.transpose(mask, (0, 2, 1))
    mask = mask[::-1].copy()
    in_mask = mask[0][:, :n_units]
    hid_mask = mask[1:-1] if n_hid_layers > 1 else None
    out_mask = mask[-1][:n_units]
    if output_multiplier > 1:
        out_mask = np.tile(out_mask, (int(output_multiplier), 1))
    return in_mask, hid_mask, out_mask


# ----------------------------------------------------------------------------
# Helpers
# ----------------------------------------------------------------------------
def _round_up(n, m):
    return ((n + m - 1) // m) * m


def prepare_made_params(W1, M1, b1, W2, M2, b2, W3, M3, b3, *, lane=128):
    """Fold static masks + 1000x scale into the weights once (host-side),
    transpose to (in, out), and zero-pad the output dim to a lane multiple so
    the kernel's final store is lane-dense."""
    Wm1 = (1000.0 * W1 * M1).T.astype(jnp.float32)      # (F, H)
    Wm2 = (1000.0 * W2 * M2).T.astype(jnp.float32)      # (H, H)
    Wm3 = (1000.0 * W3 * M3).T.astype(jnp.float32)      # (H, F_out)
    f_out = Wm3.shape[1]
    f_out_p = _round_up(max(f_out, lane), lane)
    pad = f_out_p - f_out
    Wm3p = jnp.pad(Wm3, ((0, 0), (0, pad)))
    b3p = jnp.pad(b3.astype(jnp.float32), ((0, 0), (0, pad)))
    params = (Wm1, b1.astype(jnp.float32), Wm2, b2.astype(jnp.float32), Wm3p, b3p)
    return params, f_out


# ----------------------------------------------------------------------------
# Pallas kernel: full MADE forward (3 pre-masked linears, ReLU after first two).
# Activations are (batch_tile, features) with features on the lane axis;
# weights arrive pre-masked/pre-scaled/pre-transposed as (in, out); biases are
# (1, out) for broadcast.  The final weight/bias are lane-padded so o_ref's
# last dim is a multiple of 128 (unmasked stores).
# ----------------------------------------------------------------------------
def made_kernel(x_ref, w1_ref, b1_ref, w2_ref, b2_ref, w3_ref, b3_ref, o_ref):
    h = jnp.dot(x_ref[...], w1_ref[...],
                preferred_element_type=jnp.float32) + b1_ref[...]
    h = jnp.maximum(h, 0.0)                                      # ReLU
    h = jnp.dot(h, w2_ref[...],
                preferred_element_type=jnp.float32) + b2_ref[...]
    h = jnp.maximum(h, 0.0)                                      # ReLU (+dropout p=0 == id)
    o_ref[...] = jnp.dot(h, w3_ref[...],
                         preferred_element_type=jnp.float32) + b3_ref[...]


def made_forward_pallas(x, params, out_features, *, block_m=512):
    """x: (B, F) f32.  params: output of prepare_made_params."""
    Wm1, b1, Wm2, b2, Wm3p, b3p = params
    B, F = x.shape
    H = Wm1.shape[1]
    F_out_p = Wm3p.shape[1]

    # Batch tiling: auto double-buffered x/out DMA; weights stay VMEM-resident
    # across batch tiles (constant index_map).
    tm = min(block_m, _round_up(B, 8))
    B_pad = _round_up(B, tm)
    if B_pad != B:
        x = jnp.pad(x, ((0, B_pad - B), (0, 0)))
    grid = (B_pad // tm,)

    x_spec = pl.BlockSpec((tm, F), lambda i: (i, 0))
    out_spec = pl.BlockSpec((tm, F_out_p), lambda i: (i, 0))

    def resident(arr):
        return pl.BlockSpec(arr.shape, lambda i: (0,) * arr.ndim)

    flops = 2 * B_pad * (F * H + H * H + H * F_out_p)
    bytes_accessed = 4 * (B_pad * F + F * H + H + H * H + H
                          + H * F_out_p + F_out_p + B_pad * F_out_p)
    cost = pl.CostEstimate(flops=flops, transcendentals=0,
                           bytes_accessed=bytes_accessed)

    # NOTE: at production sizes (H >= 2048) the resident weight blocks approach
    # v7x's 64 MiB VMEM -- tile H into the grid or raise vmem_limit_bytes then.
    out = pl.pallas_call(
        made_kernel,
        out_shape=jax.ShapeDtypeStruct((B_pad, F_out_p), jnp.float32),
        grid=grid,
        in_specs=[x_spec,
                  resident(Wm1), resident(b1),
                  resident(Wm2), resident(b2),
                  resident(Wm3p), resident(b3p)],
        out_specs=out_spec,
        compiler_params=pltpu.CompilerParams(
            dimension_semantics=("parallel",)),
        cost_estimate=cost,
    )(x, Wm1, b1, Wm2, b2, Wm3p, b3p)
    return out[:B, :out_features]


# Pure-JAX reference (PyTorch weight orientation: W is (out, in), F.linear).
def made_forward_ref(x, torch_style_params):
    (W1, M1, b1, W2, M2, b2, W3, M3, b3) = torch_style_params
    h = jnp.maximum(x @ (1000.0 * W1 * M1).T + b1, 0.0)
    h = jnp.maximum(h @ (1000.0 * W2 * M2).T + b2, 0.0)
    return h @ (1000.0 * W3 * M3).T + b3


if __name__ == "__main__":
    # MADE config: features == n_units of the dependency matrix.
    features = 4
    hidden_features = 32
    num_blocks = 1           # -> n_hid_layers = num_blocks + 1 = 2
    output_multiplier = 1
    batch = 8

    # The Pallas kernel is specialized to the 3-layer network the module builds
    # with num_blocks=1 (initial layer + 1 hidden block + final layer).
    assert num_blocks == 1, "kernel is specialized to num_blocks=1 (3 masked linears)"

    # Strictly lower-triangular dependency: unit i depends on all j < i.
    dependency = np.tril(np.ones((features, features), dtype=np.float32), k=-1)

    in_mask, hid_mask, out_mask = mask_generator(
        dependency, hidden_dim=hidden_features,
        n_hid_layers=num_blocks + 1, n_edges=10,
        output_multiplier=output_multiplier)
    assert hid_mask is not None and len(hid_mask) == num_blocks

    # Deterministic parameter init (nn.Linear-style uniform(-1/sqrt(fan_in), ...)).
    key = jax.random.PRNGKey(0)
    ks = jax.random.split(key, 7)

    def linear_init(kw, kb, out_f, in_f):
        bound = 1.0 / np.sqrt(in_f)
        W = jax.random.uniform(kw, (out_f, in_f), jnp.float32, -bound, bound)
        b = jax.random.uniform(kb, (1, out_f), jnp.float32, -bound, bound)
        return W, b

    W1, b1 = linear_init(ks[0], ks[1], hidden_features, features)
    W2, b2 = linear_init(ks[2], ks[3], hidden_features, hidden_features)
    W3, b3 = linear_init(ks[4], ks[5], features * output_multiplier, hidden_features)

    M1 = jnp.asarray(in_mask, jnp.float32)        # (H, F)     initial_layer mask
    M2 = jnp.asarray(hid_mask[0], jnp.float32)    # (H, H)     block 0 mask
    M3 = jnp.asarray(out_mask, jnp.float32)       # (F_out, H) final_layer mask

    x = jax.random.normal(ks[6], (batch, features), jnp.float32)

    # Host-side: fold masks + 1000x into weights, transpose, lane-pad the output.
    kernel_params, out_features = prepare_made_params(
        W1, M1, b1, W2, M2, b2, W3, M3, b3)

    out = made_forward_pallas(x, kernel_params, out_features)
    out = jax.block_until_ready(out)

    ref = made_forward_ref(x, (W1, M1, b1, W2, M2, b2, W3, M3, b3))
    out_np = np.asarray(out)
    ref_np = np.asarray(ref)
    scale = np.max(np.abs(ref_np)) + 1e-6
    assert out_np.shape == ref_np.shape, "shape mismatch vs reference"
    assert np.max(np.abs(out_np - ref_np)) / scale < 1e-4, "mismatch vs reference"

    print("KERNEL_OK")
</pallas_src>

<mosaic_0001>
module attributes {stable_mosaic.version = 11 : i64} {
  func.func @made_kernel(%arg0: i32, %arg1: memref<8x4xf32, #tpu.memory_space<vmem>>, %arg2: memref<4x32xf32, #tpu.memory_space<vmem>>, %arg3: memref<1x32xf32, #tpu.memory_space<vmem>>, %arg4: memref<32x32xf32, #tpu.memory_space<vmem>>, %arg5: memref<1x32xf32, #tpu.memory_space<vmem>>, %arg6: memref<32x128xf32, #tpu.memory_space<vmem>>, %arg7: memref<1x128xf32, #tpu.memory_space<vmem>>, %arg8: memref<8x128xf32, #tpu.memory_space<vmem>>) attributes {dimension_semantics = [#tpu.dimension_semantics<parallel>], iteration_bounds = array<i64: 1>, scalar_prefetch = 0 : i64, scratch_operands = 0 : i64, tpu.core_type = #tpu.core_type<tc>, window_params = [{transform_indices = @transform_0, window_bounds = array<i64: 8, 4>}, {pipeline_mode = #tpu.pipeline_mode<synchronous>, transform_indices = @transform_1, window_bounds = array<i64: 4, 32>}, {pipeline_mode = #tpu.pipeline_mode<synchronous>, transform_indices = @transform_2, window_bounds = array<i64: 1, 32>}, {pipeline_mode = #tpu.pipeline_mode<synchronous>, transform_indices = @transform_3, window_bounds = array<i64: 32, 32>}, {pipeline_mode = #tpu.pipeline_mode<synchronous>, transform_indices = @transform_4, window_bounds = array<i64: 1, 32>}, {pipeline_mode = #tpu.pipeline_mode<synchronous>, transform_indices = @transform_5, window_bounds = array<i64: 32, 128>}, {pipeline_mode = #tpu.pipeline_mode<synchronous>, transform_indices = @transform_6, window_bounds = array<i64: 1, 128>}, {transform_indices = @transform_7, window_bounds = array<i64: 8, 128>}]} {
    %c0 = arith.constant 0 : index
    %c0_0 = arith.constant 0 : index
    %0 = vector.load %arg1[%c0, %c0_0] : memref<8x4xf32, #tpu.memory_space<vmem>>, vector<8x4xf32>
    %c0_1 = arith.constant 0 : index
    %c0_2 = arith.constant 0 : index
    %1 = vector.load %arg2[%c0_1, %c0_2] : memref<4x32xf32, #tpu.memory_space<vmem>>, vector<4x32xf32>
    %cst = arith.constant dense<0.000000e+00> : vector<8x32xf32>
    %2 = tpu.matmul %0, %1, %cst {dimension_numbers = #tpu.dot_dimension_numbers<[1], [0], [0], [1], [0, 0, 1, 1], [], []>} : vector<8x4xf32>, vector<4x32xf32>, vector<8x32xf32> -> vector<8x32xf32>
    %c0_3 = arith.constant 0 : index
    %c0_4 = arith.constant 0 : index
    %3 = vector.load %arg3[%c0_3, %c0_4] : memref<1x32xf32, #tpu.memory_space<vmem>>, vector<1x32xf32>
    %4 = vector.broadcast %3 : vector<1x32xf32> to vector<8x32xf32>
    %5 = arith.addf %2, %4 : vector<8x32xf32>
    %cst_5 = arith.constant 0.000000e+00 : f32
    %6 = vector.broadcast %cst_5 : f32 to vector<8x32xf32>
    %7 = arith.maximumf %5, %6 : vector<8x32xf32>
    %c0_6 = arith.constant 0 : index
    %c0_7 = arith.constant 0 : index
    %8 = vector.load %arg4[%c0_6, %c0_7] : memref<32x32xf32, #tpu.memory_space<vmem>>, vector<32x32xf32>
    %cst_8 = arith.constant dense<0.000000e+00> : vector<8x32xf32>
    %9 = tpu.matmul %7, %8, %cst_8 {dimension_numbers = #tpu.dot_dimension_numbers<[1], [0], [0], [1], [0, 0, 1, 1], [], []>} : vector<8x32xf32>, vector<32x32xf32>, vector<8x32xf32> -> vector<8x32xf32>
    %c0_9 = arith.constant 0 : index
    %c0_10 = arith.constant 0 : index
    %10 = vector.load %arg5[%c0_9, %c0_10] : memref<1x32xf32, #tpu.memory_space<vmem>>, vector<1x32xf32>
    %11 = vector.broadcast %10 : vector<1x32xf32> to vector<8x32xf32>
    %12 = arith.addf %9, %11 : vector<8x32xf32>
    %cst_11 = arith.constant 0.000000e+00 : f32
    %13 = vector.broadcast %cst_11 : f32 to vector<8x32xf32>
    %14 = arith.maximumf %12, %13 : vector<8x32xf32>
    %c0_12 = arith.constant 0 : index
    %c0_13 = arith.constant 0 : index
    %15 = vector.load %arg6[%c0_12, %c0_13] : memref<32x128xf32, #tpu.memory_space<vmem>>, vector<32x128xf32>
    %cst_14 = arith.constant dense<0.000000e+00> : vector<8x128xf32>
    %16 = tpu.matmul %14, %15, %cst_14 {dimension_numbers = #tpu.dot_dimension_numbers<[1], [0], [0], [1], [0, 0, 1, 1], [], []>} : vector<8x32xf32>, vector<32x128xf32>, vector<8x128xf32> -> vector<8x128xf32>
    %c0_15 = arith.constant 0 : index
    %c0_16 = arith.constant 0 : index
    %17 = vector.load %arg7[%c0_15, %c0_16] : memref<1x128xf32, #tpu.memory_space<vmem>>, vector<1x128xf32>
    %18 = vector.broadcast %17 : vector<1x128xf32> to vector<8x128xf32>
    %19 = arith.addf %16, %18 : vector<8x128xf32>
    %c0_17 = arith.constant 0 : index
    %c0_18 = arith.constant 0 : index
    %20 = vector.load %arg8[%c0_17, %c0_18] : memref<8x128xf32, #tpu.memory_space<vmem>>, vector<8x128xf32>
    tpu.vector_store %arg8[%c0_17, %c0_18], %19 {strides = array<i32>} : memref<8x128xf32, #tpu.memory_space<vmem>>, vector<8x128xf32>,
    return
  }
  func.func @transform_0(%arg0: i32) -> (i32, i32) {
    %c0_i32 = arith.constant 0 : i32
    %c0_i32_0 = arith.constant 0 : i32
    return %arg0, %c0_i32 : i32, i32
  }
  func.func @transform_1(%arg0: i32) -> (i32, i32) {
    %c0_i32 = arith.constant 0 : i32
    %c0_i32_0 = arith.constant 0 : i32
    %c0_i32_1 = arith.constant 0 : i32
    return %c0_i32, %c0_i32_0 : i32, i32
  }
  func.func @transform_2(%arg0: i32) -> (i32, i32) {
    %c0_i32 = arith.constant 0 : i32
    %c0_i32_0 = arith.constant 0 : i32
    %c0_i32_1 = arith.constant 0 : i32
    return %c0_i32, %c0_i32_0 : i32, i32
  }
  func.func @transform_3(%arg0: i32) -> (i32, i32) {
    %c0_i32 = arith.constant 0 : i32
    %c0_i32_0 = arith.constant 0 : i32
    %c0_i32_1 = arith.constant 0 : i32
    return %c0_i32, %c0_i32_0 : i32, i32
  }
  func.func @transform_4(%arg0: i32) -> (i32, i32) {
    %c0_i32 = arith.constant 0 : i32
    %c0_i32_0 = arith.constant 0 : i32
    %c0_i32_1 = arith.constant 0 : i32
    return %c0_i32, %c0_i32_0 : i32, i32
  }
  func.func @transform_5(%arg0: i32) -> (i32, i32) {
    %c0_i32 = arith.constant 0 : i32
    %c0_i32_0 = arith.constant 0 : i32
    %c0_i32_1 = arith.constant 0 : i32
    return %c0_i32, %c0_i32_0 : i32, i32
  }
  func.func @transform_6(%arg0: i32) -> (i32, i32) {
    %c0_i32 = arith.constant 0 : i32
    %c0_i32_0 = arith.constant 0 : i32
    %c0_i32_1 = arith.constant 0 : i32
    return %c0_i32, %c0_i32_0 : i32, i32
  }
  func.func @transform_7(%arg0: i32) -> (i32, i32) {
    %c0_i32 = arith.constant 0 : i32
    %c0_i32_0 = arith.constant 0 : i32
    return %arg0, %c0_i32 : i32, i32
  }
}

</mosaic_0001>

<bundles_post_ra>
// kernel: tpu_custom_call.1
= control target key start
LH: loop header
LB: loop body
LE: loop exit
PB: predicated region body
PF: predicated region fallthrough
CT: control target
= control target key end

     0   :  { %12 = vsyncpa [#allocation3], 0  ;;  %s336_s0 = inlined_call_operand.vmem [shape: f32[8,4], index: 0, kind: input, shape index: {}]   ;;  %s337_s1 = inlined_call_operand.vmem [shape: f32[4,32], index: 1, kind: input, shape index: {}]   ;;  %s338_s2 = inlined_call_operand.vmem [shape: f32[1,32], index: 2, kind: input, shape index: {}]   ;;  %s339_s3 = inlined_call_operand.hbm [shape: f32[32,32], index: 3, kind: input, shape index: {}]   ;;  %s340_s4 = inlined_call_operand.vmem [shape: f32[1,32], index: 4, kind: input, shape index: {}]   ;;  %s341_s5 = inlined_call_operand.hbm [shape: f32[32,128], index: 5, kind: input, shape index: {}]   ;;  %s342_s6 = inlined_call_operand.vmem [shape: f32[1,128], index: 6, kind: input, shape index: {}]   ;;  %s343_s7 = inlined_call_operand.hbm [shape: f32[8,128], index: 7, kind: output, shape index: {}]  }
   0x1   :  { %13 = vsyncpa [#allocation6], 0 }
   0x2   :  { %14 = vsyncpa [#allocation4], 0  ;;  %s25_s26 = sshll.u32 %s339_s3, 4  ;;  %s267_s27 = smov [#allocation2]   ;;  %s26_s26 = int_to_ptr.hbm [resolvable:$true] %s25_s26 }
   0x3   :  { %s27_s28 = sshll.u32 %s267_s27, 4  ;;  %s40_s8 = sshll.u32 %s341_s5, 4  ;;  %s28_s28 = int_to_ptr.vmem [resolvable:$true] %s27_s28  ;;  %s41_s8 = int_to_ptr.hbm [resolvable:$true] %s40_s8 }
   0x4   :  { %s268_s9 = smov 128   ;;  %s269_s10 = smov 8  }
   0x5   :  { %33 = dma.hbm_to_vmem [thread:$0]  %s26_s26, 512, %s28_s28, [#allocation3], %s268_s9, %s268_s9, %s269_s10  }
   0x6   :  { %s270_s11 = smov [#allocation5]  }
   0x7   :  { %s42_s12 = sshll.u32 %s270_s11, 4  ;;  %s43_s12 = int_to_ptr.vmem [resolvable:$true] %s42_s12 }
   0x8   :  { %48 = dma.hbm_to_vmem [thread:$0]  %s41_s8, 512, %s43_s12, [#allocation6], %s268_s9, %s268_s9, %s269_s10  }
   0x9   :  { %261 = dma.done.wait [#allocation3], 512  }
   0xa   :  { %262 = vsyncadd [#allocation3], 4294966784 }
   0xb   :  { %263 = dma.done.wait [#allocation6], 512  }
   0xc   :  { %264 = vsyncadd [#allocation6], 4294966784  ;;  %vm69_vm0 = vcmask 1043456   ;;  %vm65_vm1 = vcmask 31744   ;;  %v60_v0 = vld [vmem:[%s337_s1] sm:$0xf] }
   0xd   :  { %v59_v1 = vld [vmem:[%s336_s0] sm:$0xff]  ;;  %v97_v2 = vld [vmem:[#allocation2 + $0x18] sm:$0xff]  ;;  %177 = vmatpush.msk.msra.mxu0 %vm69_vm0, %v60_v0  ;;  %v96_v3 = vld [vmem:[#allocation2 + $0x10] sm:$0xff]  ;;  %vm102_vm2 = vcmask 261120   ;;  %s271_s18 = smov [#allocation7]   ;;  %s166_s22 = sshll.u32 %s343_s7, 4  ;;  %s167_s22 = int_to_ptr.hbm [resolvable:$true] %s166_s22 }
   0xe   :  { %118 = vmatpush.msra.mxu1 %v97_v2  ;;  %178 = vmatmul.msk.f32.vlgmr.msra.gmra.mxu0 %vm65_vm1, %v59_v1  ;;  %v95_v4 = vld [vmem:[#allocation2 + $0x8] sm:$0xff]  ;;  %v94_v5 = vld [vmem:[#allocation2] sm:$0xff]  ;;  %v130_v6 = vld [vmem:[#allocation5 + $0x18] sm:$0xff]  ;;  %s164_s19 = sshll.u32 %s271_s18, 4  ;;  %s165_s19 = int_to_ptr.vmem [resolvable:$true] %s164_s19 }
   0xf   :  { %150 = vmatpush.msra.mxu2 %v130_v6  ;;  %v186_v7 = vld [vmem:[%s338_s2] ss:$0 sm:$0xff]  ;;  %v129_v11 = vld [vmem:[#allocation5 + $0x10] sm:$0xff]  ;;  %v128_v12 = vld [vmem:[#allocation5 + $0x8] sm:$0xff] }
  0x10   :  { %119 = vmatpush.msra.mxu1 %v96_v3  ;;  %v127_v13 = vld [vmem:[#allocation5] sm:$0xff] }
  0x11   :  { %151 = vmatpush.msra.mxu2 %v129_v11  ;;  %v187_v14 = vld [vmem:[%s340_s4] ss:$0 sm:$0xff] }
  0x12   :  { %120 = vmatpush.msra.mxu1 %v95_v4  ;;  %v188_v18 = vld [vmem:[%s342_s6] ss:$0 sm:$0xff] }
  0x13   :  { %152 = vmatpush.msra.mxu2 %v128_v12 }
  0x14   :  { %121 = vmatpush.msra.mxu1 %v94_v5 }
  0x15   :  { %153 = vmatpush.msra.mxu2 %v127_v13 }
  0x8b   :  { %v90_v8 = vpop.f32.mrf.mxu0 }
  0x8c   :  { %v91_v9 = vadd.f32 %v186_v7, %v90_v8 }
  0x8e   :  { %v93_v10 = vmax.f32 %v91_v9, 0.0 }
  0x90   :  { %179 = vmatmul.msk.f32.vlgmr.msra.gmra.mxu1 %vm102_vm2, %v93_v10 }
 0x10d   :  { %v123_v15 = vpop.f32.mrf.mxu1 }
 0x10e   :  { %v124_v16 = vadd.f32 %v187_v14, %v123_v15 }
 0x110   :  { %v126_v17 = vmax.f32 %v124_v16, 0.0 }
 0x112   :  { %180 = vmatmul.msk.f32.vlgmr.msra.gmra.mxu2 %vm102_vm2, %v126_v17 }
 0x195   :  { %v155_v19 = vpop.f32.mrf.mxu2 }
 0x196   :  { %v156_v20 = vadd.f32 %v188_v18, %v155_v19 }
 0x198   :  { %158 = vst [vmem:[#allocation7] sm:$0xff] %v156_v20 }
 0x199   :  { %169 = dma.vmem_to_hbm [thread:$0]  %s165_s19, 128, %s167_s22, [#allocation4]  }
 0x19a   :  { %265 = dma.done.wait [#allocation4], 128  }
 0x19b   :  { %266 = vsyncadd [#allocation4], 4294967168 }
 0x19c   :  { %174 = vsyncpa [#allocation3], 1 }
 0x19d   :  { %175 = vsyncpa [#allocation6], 1 }
 0x19e   :  { %176 = vsyncpa [#allocation4], 1 }

</bundles_post_ra>
